<compile_context>
chip_gen: v7x
topology: tpu7x:2x2x1
jax: 0.10.0
libtpu: 0.0.40
codegen_flags: <defaults>
</compile_context>

<pallas_src>
import functools
import math

import jax
import jax.numpy as jnp
from jax.experimental import pallas as pl
from jax.experimental.pallas import tpu as pltpu

BN_EPS = 1e-3                 # nn.BatchNorm1d(..., eps=0.001)
CLAMP_MAX = math.exp(12.0)    # torch.exp(torch.tensor([12.0])).item()
NEG_BIG = -1e30               # softmax-bias padding: exp() underflows to exactly 0


def _round_up(x, m):
    return (x + m - 1) // m * m


def _vmem_limit(estimate_bytes):
    # Explicit scoped-VMEM budget: cover the estimate with headroom for Mosaic
    # internal scratch, but stay comfortably inside v7x's 64 MiB physical VMEM.
    return int(min(max(2 * estimate_bytes, 24 * 1024 * 1024), 48 * 1024 * 1024))


def _out_kernel_vmem_est(tn, B, n_hidden, w_item):
    # Kernel 3 working set: double-buffered wsc/wdp (+bias) tiles, double-
    # buffered 3 output tiles, resident h and per-row stats.
    return (2 * 2 * tn * (n_hidden * w_item + 4)
            + 2 * 3 * B * tn * 4
            + B * n_hidden * 4 + 16 * B * 4)


def _pick_tile_n(tile_n, n_output, B, n_hidden, w_item,
                 budget_bytes=28 * 1024 * 1024):
    """Largest gene-tile width (multiple of 128) <= tile_n that fits the budget."""
    tn_cap = _round_up(n_output, 128)
    tn = min(_round_up(int(tile_n), 128), tn_cap)
    while tn > 128 and _out_kernel_vmem_est(tn, B, n_hidden, w_item) > budget_bytes:
        tn -= 128
    return max(tn, 128)


# ----------------------------- kernel 1: hidden path ---------------------------
def _bn_relu(x, gamma, beta):
    # Training-mode BatchNorm1d: batch mean + biased batch variance.
    mean = jnp.mean(x, axis=0, keepdims=True)
    var = jnp.mean(jnp.square(x - mean), axis=0, keepdims=True)
    y = (x - mean) * jax.lax.rsqrt(var + BN_EPS)
    return jnp.maximum(y * gamma + beta, 0.0)


def _hidden_kernel(n_layers, z_ref, emb_ref, w0_ref, b0_ref, g0_ref, be0_ref,
                   wpxh_ref, wpxe_ref, bpx_ref, gpx_ref, bepx_ref,
                   zpred_ref, h_ref):
    z = z_ref[...]
    emb = emb_ref[...]

    # --- b_decoder: Linear -> BN -> ReLU -------------------------------------
    h = jnp.dot(z, w0_ref[...], preferred_element_type=jnp.float32) + b0_ref[...]
    h = _bn_relu(h, g0_ref[...], be0_ref[...])
    zpred_ref[...] = h                       # z_pred

    # --- px_decoder layers: concat(h, emb) @ W == h @ W_h + emb @ W_e --------
    for l in range(n_layers):
        acc = jnp.dot(h, wpxh_ref[l], preferred_element_type=jnp.float32)
        acc = acc + jnp.dot(emb, wpxe_ref[l], preferred_element_type=jnp.float32)
        acc = acc + bpx_ref[l]
        h = _bn_relu(acc, gpx_ref[l], bepx_ref[l])

    h_ref[...] = h


# ------------------- kernel 2: streaming softmax statistics --------------------
def _softmax_stats_kernel(use_library, *refs):
    refs = list(refs)
    i = 0
    h_ref = refs[i]; i += 1
    wsc_ref = refs[i]; i += 1
    bsc_ref = refs[i]; i += 1
    lib_ref = None
    if use_library:
        lib_ref = refs[i]; i += 1
    m_out_ref, invl_out_ref, rsc_out_ref = refs[i:i + 3]; i += 3
    m_sc, l_sc = refs[i:i + 2]

    j = pl.program_id(0)

    @pl.when(j == 0)
    def _():
        m_sc[...] = jnp.full_like(m_sc, -jnp.inf)
        l_sc[...] = jnp.zeros_like(l_sc)

    lhs = h_ref[...].astype(wsc_ref.dtype)
    logits = (jnp.dot(lhs, wsc_ref[...], preferred_element_type=jnp.float32)
              + bsc_ref[...])

    m_prev = m_sc[...]
    m_new = jnp.maximum(m_prev, jnp.max(logits, axis=-1, keepdims=True))
    l_sc[...] = (l_sc[...] * jnp.exp(m_prev - m_new)
                 + jnp.sum(jnp.exp(logits - m_new), axis=-1, keepdims=True))
    m_sc[...] = m_new

    @pl.when(j == pl.num_programs(0) - 1)
    def _():
        m_out_ref[...] = m_sc[...]
        l = l_sc[...]
        inv = pl.reciprocal(l, approx=True)        # EUP slot
        inv = inv * (2.0 - l * inv)                # one Newton step -> ~f32 accurate
        invl_out_ref[...] = inv
        if use_library:
            rsc_out_ref[...] = jnp.exp(lib_ref[...]) * inv   # exp(library) / l
        else:
            rsc_out_ref[...] = inv


# ----------------------- kernel 3: tiled gene outputs --------------------------
def _output_tiles_kernel(h_ref, m_ref, invl_ref, rsc_ref,
                         wsc_ref, bsc_ref, wdp_ref, bdp_ref,
                         scale_ref, rate_ref, drop_ref):
    lhs = h_ref[...].astype(wsc_ref.dtype)

    # px_scale / px_rate tile: recompute logits (streams wsc again, but keeps
    # this kernel fully parallel over gene tiles and avoids round-tripping any
    # (B, N) scratch through HBM).
    logits = (jnp.dot(lhs, wsc_ref[...], preferred_element_type=jnp.float32)
              + bsc_ref[...])
    p = jnp.exp(logits - m_ref[...])
    scale_ref[...] = p * invl_ref[...]
    rate_ref[...] = jnp.minimum(p * rsc_ref[...], CLAMP_MAX)

    # px_dropout tile
    drop_ref[...] = (jnp.dot(lhs, wdp_ref[...], preferred_element_type=jnp.float32)
                     + bdp_ref[...])


# --------------------------------- wrapper -------------------------------------
def bdecoder_forward(params, z, batch_emb, library=None, *, tile_n=2048,
                     weights_dtype=jnp.float32):
    """Full BDecoder forward: hidden path kernel + two gene-tiled kernels."""
    use_library = library is not None
    B = z.shape[0]
    wpx = params["wpx"]
    n_layers, _, n_hidden = wpx.shape
    n_output = params["wsc"].shape[1]
    w_item = jnp.dtype(weights_dtype).itemsize

    # Split the concat weight in the wrapper (zero-cost layout plumbing; avoids
    # mid-sublane slices inside the kernel).
    wpx_h = wpx[:, :n_hidden, :]
    wpx_e = wpx[:, n_hidden:, :]

    # ---- gene-dimension tiling: TN a multiple of 128, sized to the VMEM budget
    tn = _pick_tile_n(tile_n, n_output, B, n_hidden, w_item)
    n_pad = _round_up(n_output, tn)
    pad = n_pad - n_output
    n_tiles = n_pad // tn

    wsc_p = jnp.pad(params["wsc"], ((0, 0), (0, pad))).astype(weights_dtype)
    wdp_p = jnp.pad(params["wdp"], ((0, 0), (0, pad))).astype(weights_dtype)
    bsc_p = jnp.pad(params["bsc"], ((0, 0), (0, pad)), constant_values=NEG_BIG)
    bdp_p = jnp.pad(params["bdp"], ((0, 0), (0, pad)))

    vmem = lambda: pl.BlockSpec(memory_space=pltpu.MemorySpace.VMEM)

    # ---- kernel 1: hidden path (everything tiny; grid-less) ------------------
    hidden_inputs = [z, batch_emb,
                     params["w0"], params["b0"], params["g0"], params["be0"],
                     wpx_h, wpx_e, params["bpx"], params["gpx"], params["bepx"]]
    hidden_out_shape = (jax.ShapeDtypeStruct((B, n_hidden), jnp.float32),   # z_pred
                        jax.ShapeDtypeStruct((B, n_hidden), jnp.float32))   # h

    z_pred, h = pl.pallas_call(
        functools.partial(_hidden_kernel, n_layers),
        out_shape=hidden_out_shape,
        in_specs=[vmem() for _ in hidden_inputs],
        out_specs=tuple(vmem() for _ in hidden_out_shape),
    )(*hidden_inputs)

    # ---- VMEM budgets (explicit; sized for v7x 64 MiB physical) --------------
    stats_est = (2 * tn * (n_hidden * w_item + 4)          # dbl-buffered wsc + bsc tile
                 + B * n_hidden * 4 + 24 * B * 4)
    out_est = _out_kernel_vmem_est(tn, B, n_hidden, w_item)

    # ---- kernel 2: online softmax statistics (sequential over gene tiles) ----
    stats_inputs = [h, wsc_p, bsc_p] + ([library] if use_library else [])
    stats_in_specs = [
        pl.BlockSpec((B, n_hidden), lambda j: (0, 0)),
        pl.BlockSpec((n_hidden, tn), lambda j: (0, j)),
        pl.BlockSpec((1, tn), lambda j: (0, j)),
    ]
    if use_library:
        stats_in_specs.append(pl.BlockSpec((B, 1), lambda j: (0, 0)))

    m, inv_l, rate_scale = pl.pallas_call(
        functools.partial(_softmax_stats_kernel, use_library),
        out_shape=(jax.ShapeDtypeStruct((B, 1), jnp.float32),
                   jax.ShapeDtypeStruct((B, 1), jnp.float32),
                   jax.ShapeDtypeStruct((B, 1), jnp.float32)),
        grid_spec=pltpu.PrefetchScalarGridSpec(
            num_scalar_prefetch=0,
            grid=(n_tiles,),
            in_specs=stats_in_specs,
            out_specs=[pl.BlockSpec((B, 1), lambda j: (0, 0)) for _ in range(3)],
            scratch_shapes=[pltpu.VMEM((B, 1), jnp.float32),
                            pltpu.VMEM((B, 1), jnp.float32)],
        ),
        compiler_params=pltpu.CompilerParams(
            dimension_semantics=("arbitrary",),
            vmem_limit_bytes=_vmem_limit(stats_est)),
    )(*stats_inputs)

    # ---- kernel 3: gene-tiled outputs (parallel over gene tiles) -------------
    out_inputs = [h, m, inv_l, rate_scale, wsc_p, bsc_p, wdp_p, bdp_p]
    in_specs = [
        pl.BlockSpec((B, n_hidden), lambda j: (0, 0)),
        pl.BlockSpec((B, 1), lambda j: (0, 0)),
        pl.BlockSpec((B, 1), lambda j: (0, 0)),
        pl.BlockSpec((B, 1), lambda j: (0, 0)),
        pl.BlockSpec((n_hidden, tn), lambda j: (0, j)),
        pl.BlockSpec((1, tn), lambda j: (0, j)),
        pl.BlockSpec((n_hidden, tn), lambda j: (0, j)),
        pl.BlockSpec((1, tn), lambda j: (0, j)),
    ]
    out_specs = [pl.BlockSpec((B, tn), lambda j: (0, j)) for _ in range(3)]
    out_shape = tuple(jax.ShapeDtypeStruct((B, n_pad), jnp.float32) for _ in range(3))

    px_scale_p, px_rate_p, px_drop_p = pl.pallas_call(
        _output_tiles_kernel,
        out_shape=out_shape,
        grid_spec=pltpu.PrefetchScalarGridSpec(
            num_scalar_prefetch=0,
            grid=(n_tiles,),
            in_specs=in_specs,
            out_specs=out_specs,
        ),
        compiler_params=pltpu.CompilerParams(
            dimension_semantics=("parallel",),
            vmem_limit_bytes=_vmem_limit(out_est)),
    )(*out_inputs)

    # Strip the gene-dimension padding.
    px_scale = px_scale_p[:, :n_output]
    px_rate = px_rate_p[:, :n_output]
    px_dropout = px_drop_p[:, :n_output]
    return px_scale, px_rate, px_dropout, z_pred


# ----------------------------- pure-JAX reference ------------------------------
def bdecoder_reference(params, z, batch_emb, library=None):
    def bn_relu(x, g, b):
        m = jnp.mean(x, axis=0, keepdims=True)
        v = jnp.mean(jnp.square(x - m), axis=0, keepdims=True)
        return jnp.maximum((x - m) / jnp.sqrt(v + BN_EPS) * g + b, 0.0)

    h = z @ params["w0"] + params["b0"]
    h = bn_relu(h, params["g0"], params["be0"])
    z_pred = h
    n_layers = params["wpx"].shape[0]
    for l in range(n_layers):
        hcat = jnp.concatenate([h, batch_emb], axis=-1)
        h = hcat @ params["wpx"][l] + params["bpx"][l]
        h = bn_relu(h, params["gpx"][l], params["bepx"][l])
    logits = h @ params["wsc"] + params["bsc"]
    px_scale = jax.nn.softmax(logits, axis=-1)
    px_dropout = h @ params["wdp"] + params["bdp"]
    if library is None:
        rate = px_scale
    else:
        rate = jnp.exp(library) * px_scale
    px_rate = jnp.minimum(rate, CLAMP_MAX)
    return px_scale, px_rate, px_dropout, z_pred


# ----------------------------- parameter init ----------------------------------
def init_params(key, n_input, n_batch, n_output, n_layers=1, n_hidden=128):
    def linear(k, fan_in, fan_out):
        bound = 1.0 / math.sqrt(fan_in)
        kw, kb = jax.random.split(k)
        w = jax.random.uniform(kw, (fan_in, fan_out), jnp.float32, -bound, bound)
        b = jax.random.uniform(kb, (1, fan_out), jnp.float32, -bound, bound)
        return w, b

    keys = jax.random.split(key, 3 + n_layers)
    w0, b0 = linear(keys[0], n_input, n_hidden)
    wpx, bpx = [], []
    for l in range(n_layers):
        w, b = linear(keys[1 + l], n_hidden + n_batch, n_hidden)
        wpx.append(w)
        bpx.append(b)
    wsc, bsc = linear(keys[1 + n_layers], n_hidden, n_output)
    wdp, bdp = linear(keys[2 + n_layers], n_hidden, n_output)
    return dict(
        w0=w0, b0=b0,
        g0=jnp.ones((1, n_hidden), jnp.float32),
        be0=jnp.zeros((1, n_hidden), jnp.float32),
        wpx=jnp.stack(wpx),                                  # (L, H+n_batch, H)
        bpx=jnp.stack(bpx),                                  # (L, 1, H)
        gpx=jnp.ones((n_layers, 1, n_hidden), jnp.float32),
        bepx=jnp.zeros((n_layers, 1, n_hidden), jnp.float32),
        wsc=wsc, bsc=bsc, wdp=wdp, bdp=bdp,
    )


if __name__ == "__main__":
    names = ("px_scale", "px_rate", "px_dropout", "z_pred")

    def check(tag, got, want, rtol=5e-4, atol=5e-4):
        assert got.shape == want.shape, (tag, got.shape, want.shape)
        assert jnp.allclose(got, want, rtol=rtol, atol=atol), tag

    keys = jax.random.split(jax.random.PRNGKey(0), 8)

    # --- config 1: tiny shapes, single gene tile, library provided ------------
    B, n_input, n_batch, n_output, n_layers, n_hidden = 8, 16, 8, 64, 1, 32
    params = init_params(keys[0], n_input, n_batch, n_output, n_layers, n_hidden)
    z = jax.random.normal(keys[1], (B, n_input), jnp.float32)
    batch_emb = jax.random.normal(keys[2], (B, n_batch), jnp.float32)
    library = jax.random.normal(keys[3], (B, 1), jnp.float32)

    out = jax.block_until_ready(bdecoder_forward(params, z, batch_emb, library))
    ref = bdecoder_reference(params, z, batch_emb, library)
    for name, a, b in zip(names, out, ref):
        check(name, a, b)

    # library=None path (px_rate = clamp(px_scale)).
    out2 = jax.block_until_ready(bdecoder_forward(params, z, batch_emb, None))
    ref2 = bdecoder_reference(params, z, batch_emb, None)
    for name, a, b in zip(names, out2, ref2):
        check(name, a, b)

    # --- config 2: multi-tile streaming softmax + gene padding (300 -> 384) ---
    B2, n_in2, n_b2, n_out2, n_l2, n_h2 = 16, 24, 8, 300, 2, 64
    params2 = init_params(keys[4], n_in2, n_b2, n_out2, n_l2, n_h2)
    z2 = jax.random.normal(keys[5], (B2, n_in2), jnp.float32)
    emb2 = jax.random.normal(keys[6], (B2, n_b2), jnp.float32)
    lib2 = jax.random.normal(keys[7], (B2, 1), jnp.float32)

    out3 = jax.block_until_ready(
        bdecoder_forward(params2, z2, emb2, lib2, tile_n=128))
    ref3 = bdecoder_reference(params2, z2, emb2, lib2)
    for name, a, b in zip(names, out3, ref3):
        check(name, a, b)

    # Same config with the default (adaptive) tile size.
    out3b = jax.block_until_ready(bdecoder_forward(params2, z2, emb2, lib2))
    for name, a, b in zip(names, out3b, ref3):
        check(name, a, b)

    # --- bf16 weight streaming for the two big gene matmuls (halves wsc/wdp
    # HBM traffic, MXU bf16 path; f32 accumulation).  Smoke test only since
    # bf16 weights legitimately change numerics.
    out4 = jax.block_until_ready(
        bdecoder_forward(params2, z2, emb2, lib2, tile_n=128,
                         weights_dtype=jnp.bfloat16))
    for name, a in zip(names, out4):
        assert bool(jnp.all(jnp.isfinite(a))), name

    print("KERNEL_OK")
</pallas_src>

<mosaic_0001>
module attributes {stable_mosaic.version = 11 : i64} {
  func.func @_hidden_kernel(%arg0: memref<8x16xf32, #tpu.memory_space<vmem>>, %arg1: memref<8x8xf32, #tpu.memory_space<vmem>>, %arg2: memref<16x32xf32, #tpu.memory_space<vmem>>, %arg3: memref<1x32xf32, #tpu.memory_space<vmem>>, %arg4: memref<1x32xf32, #tpu.memory_space<vmem>>, %arg5: memref<1x32xf32, #tpu.memory_space<vmem>>, %arg6: memref<1x32x32xf32, #tpu.memory_space<vmem>>, %arg7: memref<1x8x32xf32, #tpu.memory_space<vmem>>, %arg8: memref<1x1x32xf32, #tpu.memory_space<vmem>>, %arg9: memref<1x1x32xf32, #tpu.memory_space<vmem>>, %arg10: memref<1x1x32xf32, #tpu.memory_space<vmem>>, %arg11: memref<8x32xf32, #tpu.memory_space<vmem>>, %arg12: memref<8x32xf32, #tpu.memory_space<vmem>>) attributes {dimension_semantics = [], scalar_prefetch = 0 : i64, scratch_operands = 0 : i64, tpu.core_type = #tpu.core_type<tc>} {
    %c0 = arith.constant 0 : index
    %c0_0 = arith.constant 0 : index
    %0 = vector.load %arg0[%c0, %c0_0] : memref<8x16xf32, #tpu.memory_space<vmem>>, vector<8x16xf32>
    %c0_1 = arith.constant 0 : index
    %c0_2 = arith.constant 0 : index
    %1 = vector.load %arg1[%c0_1, %c0_2] : memref<8x8xf32, #tpu.memory_space<vmem>>, vector<8x8xf32>
    %c0_3 = arith.constant 0 : index
    %c0_4 = arith.constant 0 : index
    %2 = vector.load %arg2[%c0_3, %c0_4] : memref<16x32xf32, #tpu.memory_space<vmem>>, vector<16x32xf32>
    %cst = arith.constant dense<0.000000e+00> : vector<8x32xf32>
    %3 = tpu.matmul %0, %2, %cst {dimension_numbers = #tpu.dot_dimension_numbers<[1], [0], [0], [1], [0, 0, 1, 1], [], []>} : vector<8x16xf32>, vector<16x32xf32>, vector<8x32xf32> -> vector<8x32xf32>
    %c0_5 = arith.constant 0 : index
    %c0_6 = arith.constant 0 : index
    %4 = vector.load %arg3[%c0_5, %c0_6] : memref<1x32xf32, #tpu.memory_space<vmem>>, vector<1x32xf32>
    %5 = vector.broadcast %4 : vector<1x32xf32> to vector<8x32xf32>
    %6 = arith.addf %3, %5 : vector<8x32xf32>
    %c0_7 = arith.constant 0 : index
    %c0_8 = arith.constant 0 : index
    %7 = vector.load %arg4[%c0_7, %c0_8] : memref<1x32xf32, #tpu.memory_space<vmem>>, vector<1x32xf32>
    %c0_9 = arith.constant 0 : index
    %c0_10 = arith.constant 0 : index
    %8 = vector.load %arg5[%c0_9, %c0_10] : memref<1x32xf32, #tpu.memory_space<vmem>>, vector<1x32xf32>
    %cst_11 = arith.constant dense<0.000000e+00> : vector<32xf32>
    %9 = vector.multi_reduction <add>, %6, %cst_11 [0] : vector<8x32xf32> to vector<32xf32>
    %10 = vector.shape_cast %9 : vector<32xf32> to vector<1x32xf32>
    %cst_12 = arith.constant 8.000000e+00 : f32
    %11 = vector.broadcast %cst_12 : f32 to vector<1x32xf32>
    %12 = arith.divf %10, %11 : vector<1x32xf32>
    %13 = vector.broadcast %12 : vector<1x32xf32> to vector<8x32xf32>
    %14 = arith.subf %6, %13 : vector<8x32xf32>
    %15 = arith.mulf %14, %14 : vector<8x32xf32>
    %cst_13 = arith.constant dense<0.000000e+00> : vector<32xf32>
    %16 = vector.multi_reduction <add>, %15, %cst_13 [0] : vector<8x32xf32> to vector<32xf32>
    %17 = vector.shape_cast %16 : vector<32xf32> to vector<1x32xf32>
    %cst_14 = arith.constant 8.000000e+00 : f32
    %18 = vector.broadcast %cst_14 : f32 to vector<1x32xf32>
    %19 = arith.divf %17, %18 : vector<1x32xf32>
    %20 = vector.broadcast %12 : vector<1x32xf32> to vector<8x32xf32>
    %21 = arith.subf %6, %20 : vector<8x32xf32>
    %cst_15 = arith.constant 1.000000e-03 : f32
    %22 = vector.broadcast %cst_15 : f32 to vector<1x32xf32>
    %23 = arith.addf %19, %22 : vector<1x32xf32>
    %24 = math.rsqrt %23 : vector<1x32xf32>
    %25 = vector.broadcast %24 : vector<1x32xf32> to vector<8x32xf32>
    %26 = arith.mulf %21, %25 : vector<8x32xf32>
    %27 = vector.broadcast %7 : vector<1x32xf32> to vector<8x32xf32>
    %28 = arith.mulf %26, %27 : vector<8x32xf32>
    %29 = vector.broadcast %8 : vector<1x32xf32> to vector<8x32xf32>
    %30 = arith.addf %28, %29 : vector<8x32xf32>
    %cst_16 = arith.constant 0.000000e+00 : f32
    %31 = vector.broadcast %cst_16 : f32 to vector<8x32xf32>
    %32 = arith.maximumf %30, %31 : vector<8x32xf32>
    %c0_17 = arith.constant 0 : index
    %c0_18 = arith.constant 0 : index
    %33 = vector.load %arg11[%c0_17, %c0_18] : memref<8x32xf32, #tpu.memory_space<vmem>>, vector<8x32xf32>
    tpu.vector_store %arg11[%c0_17, %c0_18], %32 {strides = array<i32>} : memref<8x32xf32, #tpu.memory_space<vmem>>, vector<8x32xf32>,
    %c0_19 = arith.constant 0 : index
    %c0_20 = arith.constant 0 : index
    %c0_21 = arith.constant 0 : index
    %34 = vector.load %arg6[%c0_19, %c0_20, %c0_21] : memref<1x32x32xf32, #tpu.memory_space<vmem>>, vector<1x32x32xf32>
    %35 = vector.shape_cast %34 : vector<1x32x32xf32> to vector<32x32xf32>
    %cst_22 = arith.constant dense<0.000000e+00> : vector<8x32xf32>
    %36 = tpu.matmul %32, %35, %cst_22 {dimension_numbers = #tpu.dot_dimension_numbers<[1], [0], [0], [1], [0, 0, 1, 1], [], []>} : vector<8x32xf32>, vector<32x32xf32>, vector<8x32xf32> -> vector<8x32xf32>
    %c0_23 = arith.constant 0 : index
    %c0_24 = arith.constant 0 : index
    %c0_25 = arith.constant 0 : index
    %37 = vector.load %arg7[%c0_23, %c0_24, %c0_25] : memref<1x8x32xf32, #tpu.memory_space<vmem>>, vector<1x8x32xf32>
    %38 = vector.shape_cast %37 : vector<1x8x32xf32> to vector<8x32xf32>
    %cst_26 = arith.constant dense<0.000000e+00> : vector<8x32xf32>
    %39 = tpu.matmul %1, %38, %cst_26 {dimension_numbers = #tpu.dot_dimension_numbers<[1], [0], [0], [1], [0, 0, 1, 1], [], []>} : vector<8x8xf32>, vector<8x32xf32>, vector<8x32xf32> -> vector<8x32xf32>
    %40 = arith.addf %36, %39 : vector<8x32xf32>
    %c0_27 = arith.constant 0 : index
    %c0_28 = arith.constant 0 : index
    %c0_29 = arith.constant 0 : index
    %41 = vector.load %arg8[%c0_27, %c0_28, %c0_29] : memref<1x1x32xf32, #tpu.memory_space<vmem>>, vector<1x1x32xf32>
    %42 = vector.shape_cast %41 : vector<1x1x32xf32> to vector<1x32xf32>
    %43 = vector.broadcast %42 : vector<1x32xf32> to vector<8x32xf32>
    %44 = arith.addf %40, %43 : vector<8x32xf32>
    %c0_30 = arith.constant 0 : index
    %c0_31 = arith.constant 0 : index
    %c0_32 = arith.constant 0 : index
    %45 = vector.load %arg9[%c0_30, %c0_31, %c0_32] : memref<1x1x32xf32, #tpu.memory_space<vmem>>, vector<1x1x32xf32>
    %46 = vector.shape_cast %45 : vector<1x1x32xf32> to vector<1x32xf32>
    %c0_33 = arith.constant 0 : index
    %c0_34 = arith.constant 0 : index
    %c0_35 = arith.constant 0 : index
    %47 = vector.load %arg10[%c0_33, %c0_34, %c0_35] : memref<1x1x32xf32, #tpu.memory_space<vmem>>, vector<1x1x32xf32>
    %48 = vector.shape_cast %47 : vector<1x1x32xf32> to vector<1x32xf32>
    %cst_36 = arith.constant dense<0.000000e+00> : vector<32xf32>
    %49 = vector.multi_reduction <add>, %44, %cst_36 [0] : vector<8x32xf32> to vector<32xf32>
    %50 = vector.shape_cast %49 : vector<32xf32> to vector<1x32xf32>
    %cst_37 = arith.constant 8.000000e+00 : f32
    %51 = vector.broadcast %cst_37 : f32 to vector<1x32xf32>
    %52 = arith.divf %50, %51 : vector<1x32xf32>
    %53 = vector.broadcast %52 : vector<1x32xf32> to vector<8x32xf32>
    %54 = arith.subf %44, %53 : vector<8x32xf32>
    %55 = arith.mulf %54, %54 : vector<8x32xf32>
    %cst_38 = arith.constant dense<0.000000e+00> : vector<32xf32>
    %56 = vector.multi_reduction <add>, %55, %cst_38 [0] : vector<8x32xf32> to vector<32xf32>
    %57 = vector.shape_cast %56 : vector<32xf32> to vector<1x32xf32>
    %cst_39 = arith.constant 8.000000e+00 : f32
    %58 = vector.broadcast %cst_39 : f32 to vector<1x32xf32>
    %59 = arith.divf %57, %58 : vector<1x32xf32>
    %60 = vector.broadcast %52 : vector<1x32xf32> to vector<8x32xf32>
    %61 = arith.subf %44, %60 : vector<8x32xf32>
    %cst_40 = arith.constant 1.000000e-03 : f32
    %62 = vector.broadcast %cst_40 : f32 to vector<1x32xf32>
    %63 = arith.addf %59, %62 : vector<1x32xf32>
    %64 = math.rsqrt %63 : vector<1x32xf32>
    %65 = vector.broadcast %64 : vector<1x32xf32> to vector<8x32xf32>
    %66 = arith.mulf %61, %65 : vector<8x32xf32>
    %67 = vector.broadcast %46 : vector<1x32xf32> to vector<8x32xf32>
    %68 = arith.mulf %66, %67 : vector<8x32xf32>
    %69 = vector.broadcast %48 : vector<1x32xf32> to vector<8x32xf32>
    %70 = arith.addf %68, %69 : vector<8x32xf32>
    %cst_41 = arith.constant 0.000000e+00 : f32
    %71 = vector.broadcast %cst_41 : f32 to vector<8x32xf32>
    %72 = arith.maximumf %70, %71 : vector<8x32xf32>
    %c0_42 = arith.constant 0 : index
    %c0_43 = arith.constant 0 : index
    %73 = vector.load %arg12[%c0_42, %c0_43] : memref<8x32xf32, #tpu.memory_space<vmem>>, vector<8x32xf32>
    tpu.vector_store %arg12[%c0_42, %c0_43], %72 {strides = array<i32>} : memref<8x32xf32, #tpu.memory_space<vmem>>, vector<8x32xf32>,
    return
  }
}

</mosaic_0001>

<bundles_post_ra>
// kernel: tpu_custom_call.1
= control target key start
LH: loop header
LB: loop body
LE: loop exit
PB: predicated region body
PF: predicated region fallthrough
CT: control target
= control target key end

     0   :  { %18 = vsyncpa [#allocation3], 0  ;;  %s833_s0 = inlined_call_operand.hbm [shape: f32[8,16], index: 0, kind: input, shape index: {}]   ;;  %s834_s1 = inlined_call_operand.hbm [shape: f32[8,8], index: 1, kind: input, shape index: {}]   ;;  %s835_s2 = inlined_call_operand.hbm [shape: f32[16,32], index: 2, kind: input, shape index: {}]   ;;  %s836_s3 = inlined_call_operand.vmem [shape: f32[1,32], index: 3, kind: input, shape index: {}]   ;;  %s837_s4 = inlined_call_operand.vmem [shape: f32[1,32], index: 4, kind: input, shape index: {}]   ;;  %s838_s5 = inlined_call_operand.vmem [shape: f32[1,32], index: 5, kind: input, shape index: {}]   ;;  %s839_s6 = inlined_call_operand.hbm [shape: f32[1,32,32], index: 6, kind: input, shape index: {}]   ;;  %s840_s7 = inlined_call_operand.vmem [shape: f32[1,8,32], index: 7, kind: input, shape index: {}]   ;;  %s841_s8 = inlined_call_operand.vmem [shape: f32[1,1,32], index: 8, kind: input, shape index: {}]   ;;  %s842_s9 = inlined_call_operand.vmem [shape: f32[1,1,32], index: 9, kind: input, shape index: {}]   ;;  %s843_s10 = inlined_call_operand.vmem [shape: f32[1,1,32], index: 10, kind: input, shape index: {}]   ;;  %s844_s11 = inlined_call_operand.hbm [shape: f32[8,32], index: 11, kind: output, shape index: {0}]   ;;  %s845_s12 = inlined_call_operand.hbm [shape: f32[8,32], index: 12, kind: output, shape index: {1}]  }
   0x1   :  { %19 = vsyncpa [#allocation6], 0 }
   0x2   :  { %20 = vsyncpa [#allocation9], 0 }
   0x3   :  { %21 = vsyncpa [#allocation4], 0 }
   0x4   :  { %22 = vsyncpa [#allocation12], 0  ;;  %s657_s21 = smov [#allocation5]   ;;  %s658_s23 = smov [#allocation2]  }
   0x5   :  { %s39_s22 = sshll.u32 %s657_s21, 4  ;;  %s29_s24 = sshll.u32 %s658_s23, 4  ;;  %s40_s22 = int_to_ptr.vmem [resolvable:$true] %s39_s22  ;;  %s30_s24 = int_to_ptr.vmem [resolvable:$true] %s29_s24 }
   0x6   :  { %s515_s27 = scalar_lea.hbm %s834_s1, 128 }
   0x7   :  { %p516_p0 = scmp.ne.s32.totalorder %s834_s1, %s515_s27  ;;  %p519_p1 = scmp.lt.u32.totalorder %s515_s27, %s834_s1 }
   0x9   :  { %p521_p2 = pnand %p519_p1, %p516_p0 }
   0xb   :  { %524 = shalt.err (!%p521_p2)
}
   0xc   :  { %s525_s14 = scalar_lea.vmem %s40_s22, 128  ;;  %p530_p4 = scmp.lt.s32.totalorder %s40_s22, %s40_s22 }
   0xd   :  { %p526_p3 = scmp.ne.s32.totalorder %s40_s22, %s525_s14  ;;  %p531_p5 = scmp.lt.s32.totalorder %s525_s14, %s525_s14 }
   0xf   :  { %p532_p6 = por %p531_p5, %p530_p4 }
  0x11   :  { %p533_p7 = pnand %p532_p6, %p526_p3 }
  0x13   :  { %536 = shalt.err (!%p533_p7)
}
  0x14   :  { %42 = dma.hbm_to_vmem [thread:$0]  %s834_s1, 128, %s40_s22, [#allocation6]  }
  0x15   :  { %s537_s19 = scalar_lea.hbm %s833_s0, 128 }
  0x16   :  { %p538_p8 = scmp.ne.s32.totalorder %s833_s0, %s537_s19  ;;  %p541_p9 = scmp.lt.u32.totalorder %s537_s19, %s833_s0 }
  0x18   :  { %p543_p10 = pnand %p541_p9, %p538_p8 }
  0x1a   :  { %546 = shalt.err (!%p543_p10)
}
  0x1b   :  { %s547_s26 = scalar_lea.vmem %s30_s24, 128  ;;  %p552_p12 = scmp.lt.s32.totalorder %s30_s24, %s30_s24 }
  0x1c   :  { %p548_p11 = scmp.ne.s32.totalorder %s30_s24, %s547_s26  ;;  %p553_p13 = scmp.lt.s32.totalorder %s547_s26, %s547_s26 }
  0x1e   :  { %p554_p0 = por %p553_p13, %p552_p12 }
  0x20   :  { %p555_p1 = pnand %p554_p0, %p548_p11 }
  0x22   :  { %558 = shalt.err (!%p555_p1)
}
  0x23   :  { %32 = dma.hbm_to_vmem [thread:$0]  %s833_s0, 128, %s30_s24, [#allocation3]  }
  0x24   :  { %s659_s27 = smov [#allocation7]   ;;  %s559_s13 = scalar_lea.hbm %s835_s2, 256 }
  0x25   :  { %s48_s28 = sshll.u32 %s659_s27, 4  ;;  %p560_p2 = scmp.ne.s32.totalorder %s835_s2, %s559_s13  ;;  %s49_s28 = int_to_ptr.vmem [resolvable:$true] %s48_s28 }
  0x26   :  { %p563_p3 = scmp.lt.u32.totalorder %s559_s13, %s835_s2 }
  0x28   :  { %p565_p4 = pnand %p563_p3, %p560_p2 }
  0x2a   :  { %568 = shalt.err (!%p565_p4)
}
  0x2b   :  { %s569_s18 = scalar_lea.vmem %s49_s28, 256  ;;  %p574_p6 = scmp.lt.s32.totalorder %s49_s28, %s49_s28 }
  0x2c   :  { %p570_p5 = scmp.ne.s32.totalorder %s49_s28, %s569_s18  ;;  %p575_p7 = scmp.lt.s32.totalorder %s569_s18, %s569_s18 }
  0x2e   :  { %p576_p8 = por %p575_p7, %p574_p6 }
  0x30   :  { %p577_p9 = pnand %p576_p8, %p570_p5 }
  0x32   :  { %580 = shalt.err (!%p577_p9)
}
  0x33   :  { %s660_s0 = smov 128   ;;  %s661_s24 = smov 8  }
  0x34   :  { %54 = dma.hbm_to_vmem [thread:$0]  %s835_s2, 256, %s49_s28, [#allocation6], %s660_s0, %s660_s0, %s661_s24  }
  0x35   :  { %s662_s21 = smov [#allocation8]   ;;  %s581_s1 = scalar_lea.hbm %s839_s6, 512 }
  0x36   :  { %s66_s23 = sshll.u32 %s662_s21, 4  ;;  %p582_p10 = scmp.ne.s32.totalorder %s839_s6, %s581_s1  ;;  %s67_s23 = int_to_ptr.vmem [resolvable:$true] %s66_s23 }
  0x37   :  { %p585_p11 = scmp.lt.u32.totalorder %s581_s1, %s839_s6 }
  0x39   :  { %p587_p12 = pnand %p585_p11, %p582_p10 }
  0x3b   :  { %590 = shalt.err (!%p587_p12)
}
  0x3c   :  { %s591_s13 = scalar_lea.vmem %s67_s23, 512  ;;  %p596_p0 = scmp.lt.s32.totalorder %s67_s23, %s67_s23 }
  0x3d   :  { %p592_p13 = scmp.ne.s32.totalorder %s67_s23, %s591_s13  ;;  %p597_p1 = scmp.lt.s32.totalorder %s591_s13, %s591_s13 }
  0x3f   :  { %p598_p2 = por %p597_p1, %p596_p0 }
  0x41   :  { %p599_p3 = pnand %p598_p2, %p592_p13 }
  0x43   :  { %602 = shalt.err (!%p599_p3)
}
  0x44   :  { %72 = dma.hbm_to_vmem [thread:$0]  %s839_s6, 512, %s67_s23, [#allocation9], %s660_s0, %s660_s0, %s661_s24  }
  0x45   :  { %647 = dma.done.wait [#allocation3], 128  }
  0x46   :  { %648 = vsyncadd [#allocation3], 4294967168 }
  0x47   :  { %649 = dma.done.wait [#allocation6], 384  }
  0x48   :  { %650 = vsyncadd [#allocation6], 4294966912 }
  0x49   :  { %651 = dma.done.wait [#allocation9], 512  }
  0x4a   :  { %652 = vsyncadd [#allocation9], 4294966784  ;;  %v663_v0 = vmov 0.0|0.0   ;;  %vm664_vm0 = vmmov 0   ;;  %v665_v1 = vmov 0.0   ;;  %v95_v2 = vld [vmem:[#allocation7] sm:$0xff] }
  0x4b   :  { %491 = vmatprep.subr.bf16.mxu0 %v663_v0  ;;  %472 = vmatprep.mubr.msk.f32.mxu0 %vm664_vm0, %v665_v1  ;;  %v96_v3 = vld [vmem:[#allocation7 + $0x8] sm:$0xff]  ;;  %v93_v5 = vld [vmem:[#allocation2] sm:$0xff]  ;;  %vm104_vm1 = vcmask 130048   ;;  %v220_v7 = vld [vmem:[#allocation8 + $0x8] sm:$0xff]  ;;  %vm224_vm2 = vcmask 64512   ;;  %vm180_vm3 = vcmask 261120  }
  0x4c   :  { %494 = vmatprep.subr.bf16.mxu1 %v663_v0  ;;  %488 = vmatprep.mubr.msk.f32.mxu1 %vm664_vm0, %v665_v1  ;;  %v492_v4 = vpack.c.bf16 %v96_v3, %v95_v2  ;;  %v219_v6 = vld [vmem:[#allocation8] sm:$0xff]  ;;  %v221_v10 = vld [vmem:[#allocation8 + $0x10] sm:$0xff]  ;;  %v222_v11 = vld [vmem:[#allocation8 + $0x18] sm:$0xff]  ;;  %s666_s0 = smov [#allocation10]  }
  0x4d   :  { %v495_v8 = vpack.c.bf16 %v220_v7, %v219_v6  ;;  %v223_v9 = vld [vmem:[%s840_s7] sm:$0xff]  ;;  %v498_v12 = vpack.c.bf16 %v222_v11, %v221_v10  ;;  %v94_v13 = vld [vmem:[#allocation5] sm:$0xff]  ;;  %s424_s24 = sshll.u32 %s666_s0, 4  ;;  %s425_s24 = int_to_ptr.vmem [resolvable:$true] %s424_s24 }
  0x4e   :  { %493 = vmatpush3.bf16.msra.mxu0 %v492_v4  ;;  %v449_v14 = vld [vmem:[%s836_s3] ss:$0 sm:$0xff]  ;;  %s603_s19 = scalar_lea.vmem %s425_s24, 128  ;;  %p608_p5 = scmp.lt.s32.totalorder %s425_s24, %s425_s24 }
  0x4f   :  { %475 = vmatprep.subr.mxu0 %v665_v1  ;;  %496 = vmatpush3.bf16.msra.mxu1 %v495_v8  ;;  %v451_v38 = vld [vmem:[%s837_s4] ss:$0 sm:$0xff]  ;;  %p604_p4 = scmp.ne.s32.totalorder %s425_s24, %s603_s19  ;;  %p609_p6 = scmp.lt.s32.totalorder %s603_s19, %s603_s19 }
  0x50   :  { %497 = vmatprep.subr.bf16.mxu1 %v663_v0  ;;  %v452_v40 = vld [vmem:[%s838_s5] ss:$0 sm:$0xff] }
  0x51   :  { %473 = vmatmul.mubr.msk.f32.vlgmr.msra.gmra.mrb[0].mxu0 %vm104_vm1, %v93_v5  ;;  %p610_p7 = por %p609_p6, %p608_p5 }
  0x52   :  { %477 = vmatprep.mubr.msk.f32.mxu0 %vm664_vm0, %v665_v1  ;;  %476 = vmatpush3.msra.mxu0 %v223_v9 }
  0x53   :  { %499 = vmatpush3.bf16.msra.mxu1 %v498_v12  ;;  %p611_p8 = pnand %p610_p7, %p604_p4 }
  0x55   :  { %478 = vmatmul.mubr.msk.f32.vlgmr.msra.gmra.mrb[2].mxu0 %vm224_vm2, %v94_v13 }
 0x124   :  { %v174_v15 = vpop.f32.mrb[0].mxu0 }
 0x125   :  { %v175_v16 = vadd.f32 %v449_v14, %v174_v15  ;;  %v474_v17 = vpop.f32.mrb[1].mxu0 }
 0x127   :  { %v181_v18 = vsel %vm180_vm3, %v175_v16, 0.0 }
 0x128   :  { %v182_v19 = vrot.slane %v181_v18, 4  ;;  %v294_v44 = vpop.f32.mrb[2].mxu0 }
 0x129   :  { %v479_v45 = vpop.f32.mrb[3].mxu0 }
 0x12a   :  { %v183_v20 = vadd.f32 %v182_v19, %v181_v18 }
 0x12c   :  { %v184_v21 = vrot.slane %v183_v20, 2 }
 0x12e   :  { %v185_v22 = vadd.f32 %v184_v21, %v183_v20 }
 0x130   :  { %v186_v23 = vrot.slane %v185_v22, 1 }
 0x132   :  { %v187_v24 = vadd.f32 %v186_v23, %v185_v22 }
 0x134   :  { %v189_v25 = vmul.f32 0.125, %v187_v24 }
 0x136   :  { %v190_v26 = vsub.f32 %v175_v16, %v189_v25 }
 0x138   :  { %v191_v27 = vmul.f32 %v190_v26, %v190_v26 }
 0x13a   :  { %v192_v28 = vsel %vm180_vm3, %v191_v27, 0.0 }
 0x13b   :  { %v193_v29 = vrot.slane %v192_v28, 4 }
 0x13d   :  { %v194_v30 = vadd.f32 %v193_v29, %v192_v28 }
 0x13f   :  { %v195_v31 = vrot.slane %v194_v30, 2 }
 0x141   :  { %v196_v32 = vadd.f32 %v195_v31, %v194_v30 }
 0x143   :  { %v197_v33 = vrot.slane %v196_v32, 1 }
 0x145   :  { %v198_v34 = vadd.f32 %v197_v33, %v196_v32 }
 0x147   :  { %v199_v35 = vmul.f32 0.125, %v198_v34 }
 0x149   :  { %v200_v36 = vadd.f32 0.001, %v199_v35 }
 0x14b   :  { %511 = vrsqrt.f32 %v200_v36 }
 0x155   :  { %v512_v37 = vpop.eup %511 }
 0x156   :  { %v202_v39 = vmul.f32 %v512_v37, %v190_v26 }
 0x158   :  { %v209_v41 = vmul.f32 %v451_v38, %v202_v39 }
 0x15a   :  { %v216_v42 = vadd.f32 %v452_v40, %v209_v41 }
 0x15c   :  { %v217_v43 = vmax.f32 %v216_v42, 0.0 }
 0x15e   :  { %489 = vmatmul.mubr.msk.f32.vlgmr.msra.gmra.mrb[0].mxu1 %vm180_vm3, %v217_v43  ;;  %218 = vst.msk [vmem:[#allocation10] sm:$0xff] %vm180_vm3, %v217_v43 }
 0x15f   :  { %614 = shalt.err (!%p611_p8)
}
 0x160   :  { %s615_s20 = scalar_lea.hbm %s844_s11, 128 }
 0x161   :  { %p616_p9 = scmp.ne.s32.totalorder %s844_s11, %s615_s20  ;;  %p619_p10 = scmp.lt.u32.totalorder %s615_s20, %s844_s11 }
 0x163   :  { %p621_p11 = pnand %p619_p10, %p616_p9 }
 0x165   :  { %624 = shalt.err (!%p621_p11)
}
 0x166   :  { %427 = dma.vmem_to_hbm [thread:$0]  %s425_s24, 128, %s844_s11, [#allocation4]   ;;  %v455_v47 = vld [vmem:[%s841_s8] ss:$0 sm:$0xff] }
 0x167   :  { %v456_v7 = vld [vmem:[%s842_s9] ss:$0 sm:$0xff]  ;;  %s667_s2 = smov [#allocation11]  }
 0x168   :  { %v457_v9 = vld [vmem:[%s843_s10] ss:$0 sm:$0xff]  ;;  %s434_s28 = sshll.u32 %s667_s2, 4  ;;  %s435_s28 = int_to_ptr.vmem [resolvable:$true] %s434_s28 }
 0x169   :  { %s625_s6 = scalar_lea.vmem %s435_s28, 128  ;;  %p630_p13 = scmp.lt.s32.totalorder %s435_s28, %s435_s28 }
 0x16a   :  { %p626_p12 = scmp.ne.s32.totalorder %s435_s28, %s625_s6  ;;  %p631_p0 = scmp.lt.s32.totalorder %s625_s6, %s625_s6 }
 0x16c   :  { %p632_p1 = por %p631_p0, %p630_p13 }
 0x16e   :  { %p633_p2 = pnand %p632_p1, %p626_p12 }
 0x231   :  { %v367_v46 = vpop.f32.mrb[0].mxu1 }
 0x232   :  { %v368_v48 = vadd.f32 %v367_v46, %v294_v44  ;;  %v490_v49 = vpop.f32.mrb[1].mxu1 }
 0x234   :  { %v378_v50 = vadd.f32 %v455_v47, %v368_v48 }
 0x236   :  { %v381_v51 = vsel %vm180_vm3, %v378_v50, 0.0 }
 0x237   :  { %v382_v52 = vrot.slane %v381_v51, 4 }
 0x239   :  { %v383_v53 = vadd.f32 %v382_v52, %v381_v51 }
 0x23b   :  { %v384_v54 = vrot.slane %v383_v53, 2 }
 0x23d   :  { %v385_v55 = vadd.f32 %v384_v54, %v383_v53 }
 0x23f   :  { %v386_v56 = vrot.slane %v385_v55, 1 }
 0x241   :  { %v387_v57 = vadd.f32 %v386_v56, %v385_v55 }
 0x243   :  { %v388_v58 = vmul.f32 0.125, %v387_v57 }
 0x245   :  { %v389_v59 = vsub.f32 %v378_v50, %v388_v58 }
 0x247   :  { %v390_v60 = vmul.f32 %v389_v59, %v389_v59 }
 0x249   :  { %v391_v61 = vsel %vm180_vm3, %v390_v60, 0.0 }
 0x24a   :  { %v392_v62 = vrot.slane %v391_v61, 4 }
 0x24c   :  { %v393_v63 = vadd.f32 %v392_v62, %v391_v61 }
 0x24e   :  { %v394_v0 = vrot.slane %v393_v63, 2 }
 0x250   :  { %v395_v1 = vadd.f32 %v394_v0, %v393_v63 }
 0x252   :  { %v396_v2 = vrot.slane %v395_v1, 1 }
 0x254   :  { %v397_v3 = vadd.f32 %v396_v2, %v395_v1 }
 0x256   :  { %v398_v4 = vmul.f32 0.125, %v397_v3 }
 0x258   :  { %v399_v5 = vadd.f32 0.001, %v398_v4 }
 0x25a   :  { %513 = vrsqrt.f32 %v399_v5 }
 0x264   :  { %v514_v6 = vpop.eup %513 }
 0x265   :  { %v401_v8 = vmul.f32 %v514_v6, %v389_v59 }
 0x267   :  { %v408_v10 = vmul.f32 %v456_v7, %v401_v8 }
 0x269   :  { %v415_v11 = vadd.f32 %v457_v9, %v408_v10 }
 0x26b   :  { %v416_v12 = vmax.f32 %v415_v11, 0.0 }
 0x26d   :  { %417 = vst.msk [vmem:[#allocation11] sm:$0xff] %vm180_vm3, %v416_v12 }
 0x26e   :  { %636 = shalt.err (!%p633_p2)
}
 0x26f   :  { %s637_s15 = scalar_lea.hbm %s845_s12, 128 }
 0x270   :  { %p638_p3 = scmp.ne.s32.totalorder %s845_s12, %s637_s15  ;;  %p641_p4 = scmp.lt.u32.totalorder %s637_s15, %s845_s12 }
 0x272   :  { %p643_p5 = pnand %p641_p4, %p638_p3 }
 0x274   :  { %646 = shalt.err (!%p643_p5)
}
 0x275   :  { %437 = dma.vmem_to_hbm [thread:$0]  %s435_s28, 128, %s845_s12, [#allocation12]  }
 0x276   :  { %653 = dma.done.wait [#allocation4], 128  }
 0x277   :  { %654 = vsyncadd [#allocation4], 4294967168 }
 0x278   :  { %655 = dma.done.wait [#allocation12], 128  }
 0x279   :  { %656 = vsyncadd [#allocation12], 4294967168 }
 0x27a   :  { %444 = vsyncpa [#allocation3], 1 }
 0x27b   :  { %445 = vsyncpa [#allocation6], 1 }
 0x27c   :  { %446 = vsyncpa [#allocation9], 1 }
 0x27d   :  { %447 = vsyncpa [#allocation4], 1 }
 0x27e   :  { %448 = vsyncpa [#allocation12], 1 }

</bundles_post_ra>
